<compile_context>
chip_gen: v7x
topology: tpu7x:2x2x1
jax: 0.10.0
libtpu: 0.0.40
codegen_flags: <defaults>
</compile_context>

<pallas_src>
import math
from functools import partial

import jax
import jax.numpy as jnp
from jax.experimental import pallas as pl
from jax.experimental.pallas import tpu as pltpu


def _lane_roll(x, shift, length):
    """Circular roll along the lane (last) axis with a static shift."""
    s = shift % length
    if s == 0:
        return x
    return pltpu.roll(x, s, axis=1)


def _nn_conv2d_kernel(params_ref, x_ref, o_ref, *, w, l):
    # params_ref (SMEM, scalar-prefetched): [a, b, bias]
    a = params_ref[0]
    b = params_ref[1]
    bias = params_ref[2]

    x = x_ref[...]                       # (TN, L): TN flattened images, L = H*W

    # Incremental accumulation: only one neighbor tile live at a time.
    acc = a * x + bias

    # Vertical circular neighbors: row wrap == flat wrap -> pure lane rolls.
    acc = acc + b * _lane_roll(x, w, l)        # up    ((i-1) % H, j)
    acc = acc + b * _lane_roll(x, l - w, l)    # down  ((i+1) % H, j)

    # Horizontal circular neighbors: roll by +/-1 plus an intra-image wrap
    # fix-up at every W-wide segment edge. Masks from a cheap (1, L) iota.
    col = jax.lax.broadcasted_iota(jnp.int32, (1, l), 1) % w
    left = jnp.where(col == 0,
                     _lane_roll(x, l - w + 1, l),   # (i, W-1) for j == 0
                     _lane_roll(x, 1, l))           # (i, j-1) otherwise
    acc = acc + b * left
    right = jnp.where(col == w - 1,
                      _lane_roll(x, w - 1, l),      # (i, 0) for j == W-1
                      _lane_roll(x, l - 1, l))      # (i, j+1) otherwise
    acc = acc + b * right

    o_ref[...] = acc.astype(o_ref.dtype)


def _vmem_capacity_bytes():
    try:
        info = pltpu.get_tpu_info()
        return int(getattr(info, "vmem_capacity_bytes", 128 * 1024 * 1024))
    except Exception:
        return 128 * 1024 * 1024


def _rows_per_block(n, row_bytes, vmem_cap):
    """Images (sublane rows) per grid block, generation-aware."""
    # ~4 MiB blocks on 64 MiB-VMEM parts (v7x), ~6 MiB on 128 MiB parts
    # (v5e/v6e): big enough to amortize the ~0.35 us per-grid-step overhead,
    # small enough for double-buffered in+out plus accumulation temporaries.
    target = 4 * 1024 * 1024 if vmem_cap <= 64 * 1024 * 1024 else 6 * 1024 * 1024
    tn = max(8, (target // max(row_bytes, 1)) // 8 * 8)
    if tn >= n:
        return n      # single block; block dim == full array dim is always legal
    return tn         # multiple of 8; ragged final block is masked by Pallas


def nearest_neighbors_conv2d(x, params, use_bias=True, rows_per_block=None):
    """x: (N, 1, H, W) float32, params: (2,) float32 -> (N, 1, H, W) float32."""
    N, C, H, W = x.shape
    assert C == 1, "only in_channels == 1 supported"
    L = H * W

    a = params[0].astype(jnp.float32)
    b = params[1].astype(jnp.float32)
    bias = (-(a + 4.0 * b) / 2.0) if use_bias else jnp.zeros((), jnp.float32)
    scalars = jnp.stack([a, b, bias]).astype(jnp.float32)

    row_bytes = L * jnp.dtype(x.dtype).itemsize
    vmem_cap = _vmem_capacity_bytes()
    if 8 * row_bytes > vmem_cap // 8:
        # TODO(synk): very large H*W needs a halo-DMA H/W-tiled variant
        # instead of the whole-image lane layout + pltpu.roll.
        raise NotImplementedError("image too large for single-block lane layout")

    tn = rows_per_block if rows_per_block is not None else _rows_per_block(
        N, row_bytes, vmem_cap)
    g = pl.cdiv(N, tn)
    block_bytes = tn * row_bytes
    # Explicit scoped-VMEM budget: double-buffered in+out (4x block) plus the
    # handful of live temporaries from incremental accumulation, with headroom.
    vmem_limit = int(min(vmem_cap * 3 // 4,
                         max(32 * 1024 * 1024, 10 * block_bytes)))

    x_flat = x.reshape(N, L)   # pure reshape (C == 1): no HBM copy, no transpose

    out_flat = pl.pallas_call(
        partial(_nn_conv2d_kernel, w=W, l=L),
        out_shape=jax.ShapeDtypeStruct((N, L), x.dtype),
        grid_spec=pltpu.PrefetchScalarGridSpec(
            num_scalar_prefetch=1,
            grid=(g,),
            in_specs=[pl.BlockSpec((tn, L), lambda i, p: (i, 0))],
            out_specs=pl.BlockSpec((tn, L), lambda i, p: (i, 0)),
        ),
        compiler_params=pltpu.CompilerParams(
            dimension_semantics=("parallel",),
            vmem_limit_bytes=vmem_limit,
        ),
    )(scalars, x_flat)

    return out_flat.reshape(N, 1, H, W)


def _reference(x, params, use_bias=True):
    """Pure-JAX reference of the PyTorch forward (circular 3x3 cross conv)."""
    a, b = params[0], params[1]
    bias = -(a + 4.0 * b) / 2.0 if use_bias else 0.0
    xs = x[:, 0]  # (N, H, W)
    out = (a * xs
           + b * (jnp.roll(xs, 1, axis=1) + jnp.roll(xs, -1, axis=1)
                  + jnp.roll(xs, 1, axis=2) + jnp.roll(xs, -1, axis=2))
           + bias)
    return out[:, None]


if __name__ == "__main__":
    key = jax.random.PRNGKey(0)
    k_params, k_x1, k_x2 = jax.random.split(key, 3)

    # Deterministic parameter init (mirrors torch.rand(2) in __init__).
    params = jax.random.uniform(k_params, (2,), dtype=jnp.float32)

    # Small shape matching the module (in_channels must be 1): N=2, H=W=16.
    x1 = jax.random.normal(k_x1, (2, 1, 16, 16), dtype=jnp.float32)
    out1 = jax.block_until_ready(nearest_neighbors_conv2d(x1, params))
    assert out1.shape == (2, 1, 16, 16)
    assert jnp.allclose(out1, _reference(x1, params), atol=1e-5, rtol=1e-5), \
        "mismatch vs reference (small batch)"

    # Larger batch, default (single-block) tiling.
    x2 = jax.random.normal(k_x2, (20, 1, 16, 16), dtype=jnp.float32)
    out2 = jax.block_until_ready(nearest_neighbors_conv2d(x2, params))
    assert out2.shape == (20, 1, 16, 16)
    assert jnp.allclose(out2, _reference(x2, params), atol=1e-5, rtol=1e-5), \
        "mismatch vs reference (full-batch block)"

    # Same batch, forced small blocks: exercises the multi-step grid and the
    # ragged (masked) final block path with no jnp.pad.
    out3 = jax.block_until_ready(
        nearest_neighbors_conv2d(x2, params, rows_per_block=8))
    assert jnp.allclose(out3, _reference(x2, params), atol=1e-5, rtol=1e-5), \
        "mismatch vs reference (ragged multi-block grid)"

    print("KERNEL_OK")
</pallas_src>

<mosaic_0001>
module attributes {stable_mosaic.version = 11 : i64} {
  func.func @_nn_conv2d_kernel(%arg0: i32, %arg1: memref<3xf32, #tpu.memory_space<smem>>, %arg2: memref<2x256xf32, #tpu.memory_space<vmem>>, %arg3: memref<2x256xf32, #tpu.memory_space<vmem>>) attributes {dimension_semantics = [#tpu.dimension_semantics<parallel>], iteration_bounds = array<i64: 1>, scalar_prefetch = 1 : i64, scratch_operands = 0 : i64, tpu.core_type = #tpu.core_type<tc>, window_params = [{transform_indices = @transform_0, window_bounds = array<i64: 2, 256>}, {transform_indices = @transform_1, window_bounds = array<i64: 2, 256>}]} {
    %c0 = arith.constant 0 : index
    %0 = memref.load %arg1[%c0] : memref<3xf32, #tpu.memory_space<smem>>
    %c1 = arith.constant 1 : index
    %1 = memref.load %arg1[%c1] : memref<3xf32, #tpu.memory_space<smem>>
    %c2 = arith.constant 2 : index
    %2 = memref.load %arg1[%c2] : memref<3xf32, #tpu.memory_space<smem>>
    %c0_0 = arith.constant 0 : index
    %c0_1 = arith.constant 0 : index
    %3 = vector.load %arg2[%c0_0, %c0_1] : memref<2x256xf32, #tpu.memory_space<vmem>>, vector<2x256xf32>
    %4 = vector.broadcast %0 : f32 to vector<2x256xf32>
    %5 = arith.mulf %4, %3 : vector<2x256xf32>
    %6 = vector.broadcast %2 : f32 to vector<2x256xf32>
    %7 = arith.addf %5, %6 : vector<2x256xf32>
    %c16_i32 = arith.constant 16 : i32
    %8 = tpu.dynamic_rotate %3 by %c16_i32 dim 1 : vector<2x256xf32>, i32 -> vector<2x256xf32>
    %9 = vector.broadcast %1 : f32 to vector<2x256xf32>
    %10 = arith.mulf %9, %8 : vector<2x256xf32>
    %11 = arith.addf %7, %10 : vector<2x256xf32>
    %c240_i32 = arith.constant 240 : i32
    %12 = tpu.dynamic_rotate %3 by %c240_i32 dim 1 : vector<2x256xf32>, i32 -> vector<2x256xf32>
    %13 = vector.broadcast %1 : f32 to vector<2x256xf32>
    %14 = arith.mulf %13, %12 : vector<2x256xf32>
    %15 = arith.addf %11, %14 : vector<2x256xf32>
    %16 = tpu.iota {dimensions = array<i32: 1>} : vector<1x256xi32>
    %c16_i32_2 = arith.constant 16 : i32
    %c0_i32 = arith.constant 0 : i32
    %17 = arith.cmpi eq, %c16_i32_2, %c0_i32 : i32
    %c1_i32 = arith.constant 1 : i32
    %18 = arith.select %17, %c1_i32, %c16_i32_2 : i32
    %19 = vector.broadcast %18 : i32 to vector<1x256xi32>
    %20 = arith.remsi %16, %19 : vector<1x256xi32>
    %c0_i32_3 = arith.constant 0 : i32
    %21 = vector.broadcast %c0_i32_3 : i32 to vector<1x256xi32>
    %22 = arith.cmpi ne, %20, %21 : vector<1x256xi32>
    %c0_i32_4 = arith.constant 0 : i32
    %23 = vector.broadcast %c0_i32_4 : i32 to vector<1x256xi32>
    %24 = arith.cmpi slt, %20, %23 : vector<1x256xi32>
    %c0_i32_5 = arith.constant 0 : i32
    %25 = arith.cmpi slt, %18, %c0_i32_5 : i32
    %26 = vector.broadcast %25 : i1 to vector<1x256xi1>
    %27 = vector.broadcast %26 : vector<1x256xi1> to vector<1x256xi1>
    %28 = arith.xori %24, %27 : vector<1x256xi1>
    %29 = arith.andi %28, %22 : vector<1x256xi1>
    %30 = vector.broadcast %18 : i32 to vector<1x256xi32>
    %31 = arith.addi %20, %30 : vector<1x256xi32>
    %32 = arith.select %29, %31, %20 : vector<1x256xi1>, vector<1x256xi32>
    %c0_i32_6 = arith.constant 0 : i32
    %33 = vector.broadcast %c0_i32_6 : i32 to vector<1x256xi32>
    %34 = arith.cmpi eq, %32, %33 : vector<1x256xi32>
    %c241_i32 = arith.constant 241 : i32
    %35 = tpu.dynamic_rotate %3 by %c241_i32 dim 1 : vector<2x256xf32>, i32 -> vector<2x256xf32>
    %c1_i32_7 = arith.constant 1 : i32
    %36 = tpu.dynamic_rotate %3 by %c1_i32_7 dim 1 : vector<2x256xf32>, i32 -> vector<2x256xf32>
    %37 = vector.shape_cast %34 : vector<1x256xi1> to vector<1x256xi1>
    %38 = vector.broadcast %37 : vector<1x256xi1> to vector<2x256xi1>
    %39 = arith.select %38, %35, %36 : vector<2x256xi1>, vector<2x256xf32>
    %40 = vector.broadcast %1 : f32 to vector<2x256xf32>
    %41 = arith.mulf %40, %39 : vector<2x256xf32>
    %42 = arith.addf %15, %41 : vector<2x256xf32>
    %c15_i32 = arith.constant 15 : i32
    %43 = vector.broadcast %c15_i32 : i32 to vector<1x256xi32>
    %44 = arith.cmpi eq, %32, %43 : vector<1x256xi32>
    %c15_i32_8 = arith.constant 15 : i32
    %45 = tpu.dynamic_rotate %3 by %c15_i32_8 dim 1 : vector<2x256xf32>, i32 -> vector<2x256xf32>
    %c255_i32 = arith.constant 255 : i32
    %46 = tpu.dynamic_rotate %3 by %c255_i32 dim 1 : vector<2x256xf32>, i32 -> vector<2x256xf32>
    %47 = vector.shape_cast %44 : vector<1x256xi1> to vector<1x256xi1>
    %48 = vector.broadcast %47 : vector<1x256xi1> to vector<2x256xi1>
    %49 = arith.select %48, %45, %46 : vector<2x256xi1>, vector<2x256xf32>
    %50 = vector.broadcast %1 : f32 to vector<2x256xf32>
    %51 = arith.mulf %50, %49 : vector<2x256xf32>
    %52 = arith.addf %42, %51 : vector<2x256xf32>
    %c0_9 = arith.constant 0 : index
    %c0_10 = arith.constant 0 : index
    %53 = vector.load %arg3[%c0_9, %c0_10] : memref<2x256xf32, #tpu.memory_space<vmem>>, vector<2x256xf32>
    tpu.vector_store %arg3[%c0_9, %c0_10], %52 {strides = array<i32>} : memref<2x256xf32, #tpu.memory_space<vmem>>, vector<2x256xf32>,
    return
  }
  func.func @transform_0(%arg0: i32, %arg1: memref<3xf32, #tpu.memory_space<smem>>) -> (i32, i32) {
    %c0_i32 = arith.constant 0 : i32
    %c0_i32_0 = arith.constant 0 : i32
    return %arg0, %c0_i32 : i32, i32
  }
  func.func @transform_1(%arg0: i32, %arg1: memref<3xf32, #tpu.memory_space<smem>>) -> (i32, i32) {
    %c0_i32 = arith.constant 0 : i32
    %c0_i32_0 = arith.constant 0 : i32
    return %arg0, %c0_i32 : i32, i32
  }
}

</mosaic_0001>

<bundles_post_ra>
// kernel: tpu_custom_call.1
= control target key start
LH: loop header
LB: loop body
LE: loop exit
PB: predicated region body
PF: predicated region fallthrough
CT: control target
= control target key end

     0   :  { %s358_s0 = inlined_call_operand.hbm [shape: f32[3], index: 0, kind: input, shape index: {}]   ;;  %s359_s1 = inlined_call_operand.hbm [shape: f32[2,256], index: 1, kind: input, shape index: {}]   ;;  %s360_s2 = inlined_call_operand.hbm [shape: f32[2,256], index: 2, kind: output, shape index: {}]  }
   0x1   :  { %s215_s11 = scalar_lea.hbm %s358_s0, 16 }
   0x2   :  { %p216_p0 = scmp.ne.s32.totalorder %s358_s0, %s215_s11  ;;  %p219_p1 = scmp.lt.u32.totalorder %s215_s11, %s358_s0 }
   0x4   :  { %p221_p2 = pnand %p219_p1, %p216_p0 }
   0x6   :  { %224 = shalt.err (!%p221_p2)  }
   0x7   :  { %s275_s16 = smov [#allocation3]  }
   0x8   :  { %8 = dma.hbm_to_smem %s358_s0, 16, %s275_s16, [#allocation2] }
   0x9   :  { %269 = dma.done.wait [#allocation2], 16 }
   0xa   :  { %270 = vsyncadd [#allocation2], 4294967280 }
   0xb   :  { %10 = sfence }
   0xc   :  { %11 = vsyncpa [#allocation5], 0 }
   0xd   :  { %12 = vsyncpa [#allocation6], 0  ;;  %s276_s19 = smov [#allocation4]   ;;  %s225_s23 = scalar_lea.hbm %s359_s1, 64 }
   0xe   :  { %s19_s20 = sshll.u32 %s276_s19, 4  ;;  %p226_p3 = scmp.ne.s32.totalorder %s359_s1, %s225_s23  ;;  %s20_s20 = int_to_ptr.vmem [resolvable:$true] %s19_s20 }
   0xf   :  { %p229_p4 = scmp.lt.u32.totalorder %s225_s23, %s359_s1 }
  0x11   :  { %p231_p5 = pnand %p229_p4, %p226_p3 }
  0x13   :  { %234 = shalt.err (!%p231_p5)
}
  0x14   :  { %s235_s0 = scalar_lea.vmem %s20_s20, 64  ;;  %p240_p7 = scmp.lt.s32.totalorder %s20_s20, %s20_s20 }
  0x15   :  { %p236_p6 = scmp.ne.s32.totalorder %s20_s20, %s235_s0  ;;  %p241_p8 = scmp.lt.s32.totalorder %s235_s0, %s235_s0 }
  0x17   :  { %p242_p9 = por %p241_p8, %p240_p7 }
  0x19   :  { %p243_p10 = pnand %p242_p9, %p236_p6 }
  0x1b   :  { %246 = shalt.err (!%p243_p10)
}
  0x1c   :  { %22 = dma.hbm_to_vmem [thread:$0]  %s359_s1, 64, %s20_s20, [#allocation5]  }
  0x1d   :  { %271 = dma.done.wait [#allocation5], 64  }
  0x1e   :  { %272 = vsyncadd [#allocation5], 4294967232  ;;  %v38_v0 = vlaneseq  ;;  %v277_v1 = vmov 1983009808   ;;  %v29_v6 = vld [vmem:[#allocation4] sm:$0xf] }
  0x1f   :  { %v36_v2 = vunpack.c.l.s4 %v277_v1  ;;  %s278_s30 = smov 112   ;;  %s279_s3 = smov 16  }
  0x20   :  { %v39_v3 = vshrl.u32 %v38_v0, 7  ;;  %s280_s4 = smov 113   ;;  %s281_s1 = smov 1   ;;  %v50_v11 = vand.u32 127, %v38_v0 }
  0x21   :  { %v37_v4 = vunpack.c.0.s8 %v36_v2  ;;  %s282_s5 = smov 15   ;;  %s283_s6 = smov 127  }
  0x22   :  { %s26_s7 = sld [smem:[#allocation3]]  ;;  %s203_s8 = sld [smem:[#allocation3 + $0x1]]  ;;  %v90_v12 = vadd.s32 128, %v50_v11  ;;  %vm73_vm0 = vcmp.lt.s32.totalorder %v50_v11, 112  ;;  %v95_v15 = vand.u32 15, %v50_v11  ;;  %vm121_vm1 = vcmp.lt.s32.totalorder %v50_v11, 113 }
  0x23   :  { %v324_v5 = vsub.s32 %v37_v4, %v39_v3  ;;  %s327_s9 = sld [smem:[#allocation3 + $0x2]]  ;;  %vm128_vm2 = vcmp.lt.s32.totalorder %v50_v11, 1  ;;  %vm51_vm3 = vcmp.lt.s32.totalorder %v50_v11, 16  ;;  %vm157_vm6 = vcmp.lt.s32.totalorder %v50_v11, 15  ;;  %s284_s10 = smov [#allocation7]  }
  0x24   :  { %v102_v16 = vand.u32 15, %v90_v12  ;;  %vm330_vm4 = vcmp.eq.s32.totalorder %v95_v15, 0  ;;  %vm164_vm7 = vcmp.lt.s32.totalorder %v50_v11, 127  ;;  %vm151_vm8 = vcmp.eq.s32.totalorder %v95_v15, 15  ;;  %s194_s11 = sshll.u32 %s284_s10, 4  ;;  %s195_s11 = int_to_ptr.vmem [resolvable:$true] %s194_s11 }
  0x25   :  { %v41_v7 = vrot.slane %v29_v6, %v324_v5  ;;  %s247_s12 = scalar_lea.vmem %s195_s11, 64  ;;  %p252_p12 = scmp.lt.s32.totalorder %s195_s11, %s195_s11 }
  0x26   :  { %vm334_vm5 = vcmp.eq.s32.totalorder %v102_v16, 0  ;;  %vm152_vm9 = vcmp.eq.s32.totalorder %v102_v16, 15  ;;  %p248_p11 = scmp.ne.s32.totalorder %s195_s11, %s247_s12  ;;  %p253_p13 = scmp.lt.s32.totalorder %s247_s12, %s247_s12 }
  0x27   :  { %69 = vrot.lane.b32.xlu1 %v41_v7, %s278_s30  ;;  %45 = vrot.lane.b32.xlu0 %v41_v7, %s279_s3  ;;  %v42_v8 = vcombine.high %v41_v7, %v41_v7 }
  0x28   :  { %v30_v17 = vstv %s26_s7  ;;  %v54_v20 = vstv %s203_s8  ;;  %p254_p0 = por %p253_p13, %p252_p12 }
  0x29   :  { %v31_v23 = vmul.f32 %v30_v17, %v29_v6  ;;  %v32_v24 = vstv %s327_s9 }
  0x2a   :  { %p255_p1 = pnand %p254_p0, %p248_p11 }
  0x2b   :  { %117 = vrot.lane.b32.xlu0 %v41_v7, %s280_s4  ;;  %71 = vrot.lane.b32.xlu1 %v42_v8, %s278_s30  ;;  %v33_v44 = vadd.f32 %v32_v24, %v31_v23 }
  0x2f   :  { %124 = vrot.lane.b32.xlu0 %v41_v7, %s281_s1  ;;  %119 = vrot.lane.b32.xlu1 %v42_v8, %s280_s4 }
  0x33   :  { %126 = vrot.lane.b32.xlu1 %v42_v8, %s281_s1  ;;  %47 = vrot.lane.b32.xlu0 %v42_v8, %s279_s3 }
  0x37   :  { %155 = vrot.lane.b32.xlu1 %v42_v8, %s282_s5  ;;  %153 = vrot.lane.b32.xlu0 %v41_v7, %s282_s5 }
  0x3b   :  { %162 = vrot.lane.b32.xlu1 %v42_v8, %s283_s6  ;;  %160 = vrot.lane.b32.xlu0 %v41_v7, %s283_s6 }
  0x99   :  { %v70_v9 = vpop.permute.xlu1 %69  ;;  %v46_v10 = vpop.permute.xlu0 %45 }
  0x9d   :  { %v118_v13 = vpop.permute.xlu0 %117  ;;  %v72_v14 = vpop.permute.xlu1 %71 }
  0x9e   :  { %v74_v21 = vsel %vm73_vm0, %v70_v9, %v72_v14  ;;  %v75_v22 = vsel %vm73_vm0, %v72_v14, %v70_v9 }
  0x9f   :  { %v76_v27 = vmul.f32 %v74_v21, %v54_v20  ;;  %v77_v28 = vmul.f32 %v75_v22, %v54_v20 }
  0xa1   :  { %v125_v18 = vpop.permute.xlu0 %124  ;;  %v120_v19 = vpop.permute.xlu1 %119  ;;  %v80_v43 = vcombine.low %v76_v27, %v77_v28 }
  0xa2   :  { %v122_v29 = vsel %vm121_vm1, %v118_v13, %v120_v19  ;;  %v123_v30 = vsel %vm121_vm1, %v120_v19, %v118_v13 }
  0xa3   :  { %v87_v50 = vrot.slane %v80_v43, %v324_v5 }
  0xa5   :  { %v127_v31 = vpop.permute.xlu1 %126  ;;  %v48_v32 = vpop.permute.xlu0 %47 }
  0xa6   :  { %v129_v33 = vsel %vm128_vm2, %v125_v18, %v127_v31  ;;  %v130_v34 = vsel %vm128_vm2, %v127_v31, %v125_v18  ;;  %v52_v35 = vsel %vm51_vm3, %v46_v10, %v48_v32  ;;  %v53_v36 = vsel %vm51_vm3, %v48_v32, %v46_v10 }
  0xa7   :  { %v135_v37 = vsel %vm330_vm4, %v122_v29, %v130_v34  ;;  %v136_v38 = vsel %vm334_vm5, %v123_v30, %v129_v33  ;;  %v55_v39 = vmul.f32 %v54_v20, %v53_v36  ;;  %v56_v40 = vmul.f32 %v54_v20, %v52_v35 }
  0xa8   :  { %v137_v41 = vmul.f32 %v135_v37, %v54_v20  ;;  %v138_v42 = vmul.f32 %v136_v38, %v54_v20 }
  0xa9   :  { %v59_v45 = vcombine.low %v55_v39, %v56_v40  ;;  %v156_v46 = vpop.permute.xlu1 %155  ;;  %v154_v47 = vpop.permute.xlu0 %153 }
  0xaa   :  { %v141_v48 = vcombine.low %v137_v41, %v138_v42  ;;  %v158_v54 = vsel %vm157_vm6, %v154_v47, %v156_v46  ;;  %v159_v55 = vsel %vm157_vm6, %v156_v46, %v154_v47 }
  0xab   :  { %v66_v49 = vrot.slane %v59_v45, %v324_v5 }
  0xac   :  { %v148_v61 = vrot.slane %v141_v48, %v324_v5 }
  0xad   :  { %v68_v51 = vadd.f32 %v66_v49, %v33_v44  ;;  %v163_v52 = vpop.permute.xlu1 %162  ;;  %v161_v53 = vpop.permute.xlu0 %160 }
  0xae   :  { %v165_v56 = vsel %vm164_vm7, %v161_v53, %v163_v52  ;;  %v166_v57 = vsel %vm164_vm7, %v163_v52, %v161_v53 }
  0xaf   :  { %v171_v58 = vsel %vm151_vm8, %v159_v55, %v165_v56  ;;  %v172_v59 = vsel %vm152_vm9, %v158_v54, %v166_v57  ;;  %v89_v60 = vadd.f32 %v87_v50, %v68_v51 }
  0xb0   :  { %v173_v62 = vmul.f32 %v171_v58, %v54_v20  ;;  %v174_v63 = vmul.f32 %v172_v59, %v54_v20 }
  0xb1   :  { %v150_v0 = vadd.f32 %v148_v61, %v89_v60 }
  0xb2   :  { %v177_v1 = vcombine.low %v173_v62, %v174_v63 }
  0xb4   :  { %v184_v2 = vrot.slane %v177_v1, %v324_v5 }
  0xb6   :  { %v186_v3 = vadd.f32 %v184_v2, %v150_v0 }
  0xb8   :  { %187 = vst [vmem:[#allocation7] sm:$0xf] %v186_v3 }
  0xb9   :  { %258 = shalt.err (!%p255_p1)
}
  0xba   :  { %s259_s15 = scalar_lea.hbm %s360_s2, 64 }
  0xbb   :  { %p260_p2 = scmp.ne.s32.totalorder %s360_s2, %s259_s15  ;;  %p263_p3 = scmp.lt.u32.totalorder %s259_s15, %s360_s2 }
  0xbd   :  { %p265_p4 = pnand %p263_p3, %p260_p2 }
  0xbf   :  { %268 = shalt.err (!%p265_p4)
}
  0xc0   :  { %197 = dma.vmem_to_hbm [thread:$0]  %s195_s11, 64, %s360_s2, [#allocation6]  }
  0xc1   :  { %273 = dma.done.wait [#allocation6], 64  }
  0xc2   :  { %274 = vsyncadd [#allocation6], 4294967232 }
  0xc3   :  { %201 = vsyncpa [#allocation5], 1 }
  0xc4   :  { %202 = vsyncpa [#allocation6], 1 }

</bundles_post_ra>
